<compile_context>
chip_gen: v6e
topology: v6e:2x2x1
jax: 0.10.0
libtpu: 0.0.40
codegen_flags: <defaults>
</compile_context>

<pallas_src>
import jax
import jax.numpy as jnp
from jax import lax
from jax.experimental import pallas as pl
from jax.experimental.pallas import tpu as pltpu


def _round_up(x, m):
    return (x + m - 1) // m * m


def _make_deepfm_kernel(num_sparse_features):
    F = num_sparse_features

    def kernel(count_ref, cat_ref, w1_ref, b1_ref, w2_ref, b2_ref,
               wdeep_de_ref, fused_ref, bdeep_ref,
               wlog_de_ref, wlog_deep_ref, wlog_fm_ref, blog_ref, out_ref):
        bf16 = jnp.bfloat16
        f32 = jnp.float32
        TB = count_ref.shape[0]
        D = bdeep_ref.shape[1]
        total_card = fused_ref.shape[0]

        # DenseEmbedding: Linear -> ReLU -> Linear -> ReLU (bf16 MXU, f32 acc).
        h = jnp.dot(count_ref[...], w1_ref[...], preferred_element_type=f32) + b1_ref[...]
        h = jnp.maximum(h, 0.0)
        de = jnp.dot(h.astype(bf16), w2_ref[...], preferred_element_type=f32) + b2_ref[...]
        de = jnp.maximum(de, 0.0)                      # (TB, E) f32

        # Sparse path: multi-hot over the concatenated (offset) category
        # vocabulary, single MXU matmul against the fused
        # [table @ wdeep_piece | rowsum | rowsum of squares] table.
        iota = lax.broadcasted_iota(jnp.int32, (TB, total_card), 1)  # hoisted once
        cat = cat_ref[...]                             # (TB, F) int32, pre-offset
        multihot = (cat[:, 0:1] == iota).astype(bf16)
        for f in range(1, F):
            multihot = multihot + (cat[:, f:f + 1] == iota).astype(bf16)
        fused = jnp.dot(multihot, fused_ref[...],
                        preferred_element_type=f32)    # (TB, D+2) f32

        # DeepLayer: dense piece (K=E matmul) + fused sparse contribution.
        deep = jnp.dot(de.astype(bf16), wdeep_de_ref[...], preferred_element_type=f32)
        deep = jnp.maximum(deep + fused[:, :D] + bdeep_ref[...], 0.0)  # (TB, D)

        # FactorizedMachine: running sums; the concat([de, sparse...]) is never
        # materialized (sparse parts come pre-reduced from the fused matmul).
        s = jnp.sum(de, axis=1, keepdims=True) + fused[:, D:D + 1]
        sq = jnp.sum(de * de, axis=1, keepdims=True) + fused[:, D + 1:D + 2]
        fm = 0.5 * (s * s - sq)                        # (TB, 1)

        # LogitsLayer (single output column): elementwise multiply + row
        # reduction on VPU/XLU; keep it off the MXU.
        out = jnp.sum(de * wlog_de_ref[...], axis=1, keepdims=True)
        out = out + jnp.sum(deep * wlog_deep_ref[...], axis=1, keepdims=True)
        out = out + fm * wlog_fm_ref[...]
        out_ref[...] = out + blog_ref[...]

    return kernel


def deepfm_forward(count_features, category_features, params, emb_tables,
                   feature_names, tile_b=1024):
    """Runs the DeepFM forward pass. Returns (B, 1) f32 logits."""
    B, dense_in = count_features.shape
    F = len(feature_names)
    E = params["w2"].shape[1]
    D = params["wdeep"].shape[1]
    bf16 = jnp.bfloat16
    f32 = jnp.float32

    # ---- Batch tiling: TB rows per grid step, multiple of 16; aim for >= 2
    # grid steps when the batch allows it (v7x megacore), pad ragged batch.
    TB = min(tile_b, _round_up(B, 16))
    if B > 16:
        TB = min(TB, _round_up((B + 1) // 2, 16))
    TB = _round_up(TB, 16)
    Bp = _round_up(B, TB)
    grid = (Bp // TB,)

    # ---- Host-side precompute (all in f32, cast to bf16 at the end).
    wdeep = params["wdeep"].astype(f32)                 # ((1+F)*E, D)
    wdeep_dense = wdeep[0:E].astype(bf16)               # dense piece of deep W

    # Fused sparse table: per feature, [table @ wdeep_piece | rowsum | rowsum^2]
    # concatenated over features with index offsets (EmbeddingBag mode='mean'
    # with one index per bag == plain row gather).
    fused_blocks = []
    offsets = []
    off = 0
    for f, name in enumerate(feature_names):
        t = emb_tables[name].astype(f32)                 # (card_f, E)
        wpiece = wdeep[E + f * E:E + (f + 1) * E]        # (E, D)
        m = jnp.concatenate(
            [t @ wpiece,
             jnp.sum(t, axis=1, keepdims=True),
             jnp.sum(t * t, axis=1, keepdims=True)], axis=1)   # (card_f, D+2)
        fused_blocks.append(m)
        offsets.append(off)
        off += t.shape[0]
    total_card = off
    total_card_p = _round_up(total_card, 128)            # lane-friendly contraction
    fused = jnp.concatenate(fused_blocks, axis=0)         # (total_card, D+2)
    fused = jnp.pad(fused, ((0, total_card_p - total_card), (0, 0))).astype(bf16)

    # Pre-split / pre-transpose the logits weights so the kernel's logits layer
    # is pure VPU work.
    wlog = params["wlog"].astype(f32)
    wlog_de = wlog[0:E].T                 # (1, E)
    wlog_deep = wlog[E:E + D].T           # (1, D)
    wlog_fm = wlog[E + D:E + D + 1].T     # (1, 1)

    # ---- Per-batch inputs: bf16 count stream, offset int32 category indices.
    count_bf16 = count_features.astype(bf16)
    cat_off = category_features.astype(jnp.int32) + jnp.asarray(
        offsets, dtype=jnp.int32)[None, :]
    if Bp != B:
        count_bf16 = jnp.pad(count_bf16, ((0, Bp - B), (0, 0)))
        cat_off = jnp.pad(cat_off, ((0, Bp - B), (0, 0)))

    args = [count_bf16, cat_off,
            params["w1"].astype(bf16), params["b1"].astype(f32),
            params["w2"].astype(bf16), params["b2"].astype(f32),
            wdeep_dense, fused, params["bdeep"].astype(f32),
            wlog_de, wlog_deep, wlog_fm, params["blog"].astype(f32)]

    def tiled(a):   # per-batch inputs: tile along batch, full feature width
        return pl.BlockSpec((TB, a.shape[1]), lambda i: (i, 0))

    def const(a):   # weights / fused table: full-array block, VMEM-resident
        return pl.BlockSpec(a.shape, lambda i: (0, 0))

    in_specs = [tiled(args[0]), tiled(args[1])] + [const(a) for a in args[2:]]
    out_spec = pl.BlockSpec((TB, 1), lambda i: (i, 0))

    compiler_kwargs = dict(dimension_semantics=("parallel",))
    if TB >= 8192:
        # Rough per-step footprint: double-buffered inputs/output (the int32
        # category tile and the (TB,1) output lane-pad to 128) plus in-kernel
        # temporaries (iota, multi-hot, de/deep/fused activations).
        per_row = 2 * (dense_in * 2 + 128 * 4 + 128 * 4) + 6 * total_card_p + 8 * (E + D)
        compiler_kwargs["vmem_limit_bytes"] = int(per_row * TB * 1.25) + (4 << 20)

    out = pl.pallas_call(
        _make_deepfm_kernel(F),
        out_shape=jax.ShapeDtypeStruct((Bp, 1), jnp.float32),
        grid=grid,
        in_specs=in_specs,
        out_specs=out_spec,
        compiler_params=pltpu.CompilerParams(**compiler_kwargs),
    )(*args)
    return out[:B]


def reference_forward(count_features, category_features, emb_tables,
                      feature_names, params):
    """Pure-JAX (f32) replica of the PyTorch DeepFM.forward for validation."""
    relu = lambda v: jnp.maximum(v, 0.0)
    de = relu(count_features @ params["w1"] + params["b1"])
    de = relu(de @ params["w2"] + params["b2"])
    sparse = [emb_tables[name][category_features[:, i]]
              for i, name in enumerate(feature_names)]
    flat = jnp.concatenate([de] + sparse, axis=1)
    deep = relu(flat @ params["wdeep"] + params["bdeep"])
    s = jnp.sum(flat, axis=1, keepdims=True)
    sq = jnp.sum(flat * flat, axis=1, keepdims=True)
    fm = 0.5 * (s * s - sq)
    logits_in = jnp.concatenate([de, deep, fm], axis=1)
    return logits_in @ params["wlog"] + params["blog"]


if __name__ == "__main__":
    # Model hyper-parameters (small, consistent with DeepFM.__init__).
    embedding_dims = 16
    category_cardinalities = {"cat_a": 10, "cat_b": 20, "cat_c": 30}
    dense_in = 16
    dense_hidden = 32
    deep_out = 32
    B = 64
    F = len(category_cardinalities)
    feature_names = list(category_cardinalities.keys())

    key = jax.random.PRNGKey(0)
    keys = jax.random.split(key, 16)

    # Deterministic synthetic parameters, (in_features, out_features) layout.
    params = {
        "w1": 0.1 * jax.random.normal(keys[0], (dense_in, dense_hidden), jnp.float32),
        "b1": 0.1 * jax.random.normal(keys[1], (1, dense_hidden), jnp.float32),
        "w2": 0.1 * jax.random.normal(keys[2], (dense_hidden, embedding_dims), jnp.float32),
        "b2": 0.1 * jax.random.normal(keys[3], (1, embedding_dims), jnp.float32),
        "wdeep": 0.1 * jax.random.normal(keys[4], ((1 + F) * embedding_dims, deep_out), jnp.float32),
        "bdeep": 0.1 * jax.random.normal(keys[5], (1, deep_out), jnp.float32),
        "wlog": 0.1 * jax.random.normal(keys[6], (embedding_dims + deep_out + 1, 1), jnp.float32),
        "blog": 0.1 * jax.random.normal(keys[7], (1, 1), jnp.float32),
    }
    emb_tables = {
        name: 0.1 * jax.random.normal(keys[8 + i], (card, embedding_dims), jnp.float32)
        for i, (name, card) in enumerate(category_cardinalities.items())
    }

    # Inputs.
    count_features = jax.random.normal(keys[12], (B, dense_in), jnp.float32)
    category_features = jnp.stack(
        [jax.random.randint(jax.random.fold_in(keys[13], i), (B,), 0,
                            category_cardinalities[n], dtype=jnp.int32)
         for i, n in enumerate(feature_names)], axis=1)   # (B, F) int32

    # Default tile_b=1024 -> TB=32 here (>= 2 grid steps for megacore sharding).
    logits = deepfm_forward(count_features, category_features, params,
                            emb_tables, feature_names)
    logits = jax.block_until_ready(logits)

    ref = reference_forward(count_features, category_features, emb_tables,
                            feature_names, params)
    assert logits.shape == (B, 1)
    # bf16 MXU operands / fused bf16 table -> looser tolerance vs f32 reference.
    assert jnp.allclose(logits, ref, atol=2e-2, rtol=2e-2), (
        float(jnp.max(jnp.abs(logits - ref))))
    print("KERNEL_OK")
</pallas_src>

<mosaic_0001>
module attributes {stable_mosaic.version = 11 : i64} {
  func.func @kernel(%arg0: i32, %arg1: memref<32x16xbf16, #tpu.memory_space<vmem>>, %arg2: memref<32x3xi32, #tpu.memory_space<vmem>>, %arg3: memref<16x32xbf16, #tpu.memory_space<vmem>>, %arg4: memref<1x32xf32, #tpu.memory_space<vmem>>, %arg5: memref<32x16xbf16, #tpu.memory_space<vmem>>, %arg6: memref<1x16xf32, #tpu.memory_space<vmem>>, %arg7: memref<16x32xbf16, #tpu.memory_space<vmem>>, %arg8: memref<128x34xbf16, #tpu.memory_space<vmem>>, %arg9: memref<1x32xf32, #tpu.memory_space<vmem>>, %arg10: memref<1x16xf32, #tpu.memory_space<vmem>>, %arg11: memref<1x32xf32, #tpu.memory_space<vmem>>, %arg12: memref<1x1xf32, #tpu.memory_space<vmem>>, %arg13: memref<1x1xf32, #tpu.memory_space<vmem>>, %arg14: memref<32x1xf32, #tpu.memory_space<vmem>>) attributes {dimension_semantics = [#tpu.dimension_semantics<parallel>], iteration_bounds = array<i64: 2>, scalar_prefetch = 0 : i64, scratch_operands = 0 : i64, tpu.core_type = #tpu.core_type<tc>, window_params = [{transform_indices = @transform_0, window_bounds = array<i64: 32, 16>}, {transform_indices = @transform_1, window_bounds = array<i64: 32, 3>}, {pipeline_mode = #tpu.pipeline_mode<synchronous>, transform_indices = @transform_2, window_bounds = array<i64: 16, 32>}, {pipeline_mode = #tpu.pipeline_mode<synchronous>, transform_indices = @transform_3, window_bounds = array<i64: 1, 32>}, {pipeline_mode = #tpu.pipeline_mode<synchronous>, transform_indices = @transform_4, window_bounds = array<i64: 32, 16>}, {pipeline_mode = #tpu.pipeline_mode<synchronous>, transform_indices = @transform_5, window_bounds = array<i64: 1, 16>}, {pipeline_mode = #tpu.pipeline_mode<synchronous>, transform_indices = @transform_6, window_bounds = array<i64: 16, 32>}, {pipeline_mode = #tpu.pipeline_mode<synchronous>, transform_indices = @transform_7, window_bounds = array<i64: 128, 34>}, {pipeline_mode = #tpu.pipeline_mode<synchronous>, transform_indices = @transform_8, window_bounds = array<i64: 1, 32>}, {pipeline_mode = #tpu.pipeline_mode<synchronous>, transform_indices = @transform_9, window_bounds = array<i64: 1, 16>}, {pipeline_mode = #tpu.pipeline_mode<synchronous>, transform_indices = @transform_10, window_bounds = array<i64: 1, 32>}, {pipeline_mode = #tpu.pipeline_mode<synchronous>, transform_indices = @transform_11, window_bounds = array<i64: 1, 1>}, {pipeline_mode = #tpu.pipeline_mode<synchronous>, transform_indices = @transform_12, window_bounds = array<i64: 1, 1>}, {transform_indices = @transform_13, window_bounds = array<i64: 32, 1>}]} {
    %c0 = arith.constant 0 : index
    %c0_0 = arith.constant 0 : index
    %0 = vector.load %arg1[%c0, %c0_0] : memref<32x16xbf16, #tpu.memory_space<vmem>>, vector<32x16xbf16>
    %c0_1 = arith.constant 0 : index
    %c0_2 = arith.constant 0 : index
    %1 = vector.load %arg3[%c0_1, %c0_2] : memref<16x32xbf16, #tpu.memory_space<vmem>>, vector<16x32xbf16>
    %cst = arith.constant dense<0.000000e+00> : vector<32x32xf32>
    %2 = tpu.matmul %0, %1, %cst {dimension_numbers = #tpu.dot_dimension_numbers<[1], [0], [0], [1], [0, 0, 1, 1], [], []>} : vector<32x16xbf16>, vector<16x32xbf16>, vector<32x32xf32> -> vector<32x32xf32>
    %c0_3 = arith.constant 0 : index
    %c0_4 = arith.constant 0 : index
    %3 = vector.load %arg4[%c0_3, %c0_4] : memref<1x32xf32, #tpu.memory_space<vmem>>, vector<1x32xf32>
    %4 = vector.broadcast %3 : vector<1x32xf32> to vector<32x32xf32>
    %5 = arith.addf %2, %4 : vector<32x32xf32>
    %cst_5 = arith.constant 0.000000e+00 : f32
    %6 = vector.broadcast %cst_5 : f32 to vector<32x32xf32>
    %7 = arith.maximumf %5, %6 : vector<32x32xf32>
    %8 = arith.truncf %7 : vector<32x32xf32> to vector<32x32xbf16>
    %c0_6 = arith.constant 0 : index
    %c0_7 = arith.constant 0 : index
    %9 = vector.load %arg5[%c0_6, %c0_7] : memref<32x16xbf16, #tpu.memory_space<vmem>>, vector<32x16xbf16>
    %cst_8 = arith.constant dense<0.000000e+00> : vector<32x16xf32>
    %10 = tpu.matmul %8, %9, %cst_8 {dimension_numbers = #tpu.dot_dimension_numbers<[1], [0], [0], [1], [0, 0, 1, 1], [], []>} : vector<32x32xbf16>, vector<32x16xbf16>, vector<32x16xf32> -> vector<32x16xf32>
    %c0_9 = arith.constant 0 : index
    %c0_10 = arith.constant 0 : index
    %11 = vector.load %arg6[%c0_9, %c0_10] : memref<1x16xf32, #tpu.memory_space<vmem>>, vector<1x16xf32>
    %12 = vector.broadcast %11 : vector<1x16xf32> to vector<32x16xf32>
    %13 = arith.addf %10, %12 : vector<32x16xf32>
    %cst_11 = arith.constant 0.000000e+00 : f32
    %14 = vector.broadcast %cst_11 : f32 to vector<32x16xf32>
    %15 = arith.maximumf %13, %14 : vector<32x16xf32>
    %16 = tpu.iota {dimensions = array<i32: 1>} : vector<32x128xi32>
    %c0_12 = arith.constant 0 : index
    %c0_13 = arith.constant 0 : index
    %17 = vector.load %arg2[%c0_12, %c0_13] : memref<32x3xi32, #tpu.memory_space<vmem>>, vector<32x3xi32>
    %18 = vector.extract_strided_slice %17 {offsets = [0, 0], sizes = [32, 1], strides = [1, 1]} : vector<32x3xi32> to vector<32x1xi32>
    %19 = vector.broadcast %18 : vector<32x1xi32> to vector<32x128xi32>
    %20 = arith.cmpi eq, %19, %16 : vector<32x128xi32>
    %21 = arith.extui %20 : vector<32x128xi1> to vector<32x128xi32>
    %22 = arith.sitofp %21 : vector<32x128xi32> to vector<32x128xf32>
    %23 = arith.truncf %22 : vector<32x128xf32> to vector<32x128xbf16>
    %24 = vector.extract_strided_slice %17 {offsets = [0, 1], sizes = [32, 1], strides = [1, 1]} : vector<32x3xi32> to vector<32x1xi32>
    %25 = vector.broadcast %24 : vector<32x1xi32> to vector<32x128xi32>
    %26 = arith.cmpi eq, %25, %16 : vector<32x128xi32>
    %27 = arith.extui %26 : vector<32x128xi1> to vector<32x128xi32>
    %28 = arith.sitofp %27 : vector<32x128xi32> to vector<32x128xf32>
    %29 = arith.truncf %28 : vector<32x128xf32> to vector<32x128xbf16>
    %30 = arith.addf %23, %29 : vector<32x128xbf16>
    %31 = vector.extract_strided_slice %17 {offsets = [0, 2], sizes = [32, 1], strides = [1, 1]} : vector<32x3xi32> to vector<32x1xi32>
    %32 = vector.broadcast %31 : vector<32x1xi32> to vector<32x128xi32>
    %33 = arith.cmpi eq, %32, %16 : vector<32x128xi32>
    %34 = arith.extui %33 : vector<32x128xi1> to vector<32x128xi32>
    %35 = arith.sitofp %34 : vector<32x128xi32> to vector<32x128xf32>
    %36 = arith.truncf %35 : vector<32x128xf32> to vector<32x128xbf16>
    %37 = arith.addf %30, %36 : vector<32x128xbf16>
    %c0_14 = arith.constant 0 : index
    %c0_15 = arith.constant 0 : index
    %38 = vector.load %arg8[%c0_14, %c0_15] : memref<128x34xbf16, #tpu.memory_space<vmem>>, vector<128x34xbf16>
    %cst_16 = arith.constant dense<0.000000e+00> : vector<32x34xf32>
    %39 = tpu.matmul %37, %38, %cst_16 {dimension_numbers = #tpu.dot_dimension_numbers<[1], [0], [0], [1], [0, 0, 1, 1], [], []>} : vector<32x128xbf16>, vector<128x34xbf16>, vector<32x34xf32> -> vector<32x34xf32>
    %40 = arith.truncf %15 : vector<32x16xf32> to vector<32x16xbf16>
    %c0_17 = arith.constant 0 : index
    %c0_18 = arith.constant 0 : index
    %41 = vector.load %arg7[%c0_17, %c0_18] : memref<16x32xbf16, #tpu.memory_space<vmem>>, vector<16x32xbf16>
    %cst_19 = arith.constant dense<0.000000e+00> : vector<32x32xf32>
    %42 = tpu.matmul %40, %41, %cst_19 {dimension_numbers = #tpu.dot_dimension_numbers<[1], [0], [0], [1], [0, 0, 1, 1], [], []>} : vector<32x16xbf16>, vector<16x32xbf16>, vector<32x32xf32> -> vector<32x32xf32>
    %43 = vector.extract_strided_slice %39 {offsets = [0, 0], sizes = [32, 32], strides = [1, 1]} : vector<32x34xf32> to vector<32x32xf32>
    %44 = arith.addf %42, %43 : vector<32x32xf32>
    %c0_20 = arith.constant 0 : index
    %c0_21 = arith.constant 0 : index
    %45 = vector.load %arg9[%c0_20, %c0_21] : memref<1x32xf32, #tpu.memory_space<vmem>>, vector<1x32xf32>
    %46 = vector.broadcast %45 : vector<1x32xf32> to vector<32x32xf32>
    %47 = arith.addf %44, %46 : vector<32x32xf32>
    %cst_22 = arith.constant 0.000000e+00 : f32
    %48 = vector.broadcast %cst_22 : f32 to vector<32x32xf32>
    %49 = arith.maximumf %47, %48 : vector<32x32xf32>
    %cst_23 = arith.constant dense<0.000000e+00> : vector<32xf32>
    %50 = vector.multi_reduction <add>, %15, %cst_23 [1] : vector<32x16xf32> to vector<32xf32>
    %51 = vector.shape_cast %50 : vector<32xf32> to vector<32x1xf32>
    %52 = vector.extract_strided_slice %39 {offsets = [0, 32], sizes = [32, 1], strides = [1, 1]} : vector<32x34xf32> to vector<32x1xf32>
    %53 = arith.addf %51, %52 : vector<32x1xf32>
    %54 = arith.mulf %15, %15 : vector<32x16xf32>
    %cst_24 = arith.constant dense<0.000000e+00> : vector<32xf32>
    %55 = vector.multi_reduction <add>, %54, %cst_24 [1] : vector<32x16xf32> to vector<32xf32>
    %56 = vector.shape_cast %55 : vector<32xf32> to vector<32x1xf32>
    %57 = vector.extract_strided_slice %39 {offsets = [0, 33], sizes = [32, 1], strides = [1, 1]} : vector<32x34xf32> to vector<32x1xf32>
    %58 = arith.addf %56, %57 : vector<32x1xf32>
    %59 = arith.mulf %53, %53 : vector<32x1xf32>
    %60 = arith.subf %59, %58 : vector<32x1xf32>
    %cst_25 = arith.constant 5.000000e-01 : f32
    %61 = vector.broadcast %cst_25 : f32 to vector<32x1xf32>
    %62 = arith.mulf %61, %60 : vector<32x1xf32>
    %c0_26 = arith.constant 0 : index
    %c0_27 = arith.constant 0 : index
    %63 = vector.load %arg10[%c0_26, %c0_27] : memref<1x16xf32, #tpu.memory_space<vmem>>, vector<1x16xf32>
    %64 = vector.broadcast %63 : vector<1x16xf32> to vector<32x16xf32>
    %65 = arith.mulf %15, %64 : vector<32x16xf32>
    %cst_28 = arith.constant dense<0.000000e+00> : vector<32xf32>
    %66 = vector.multi_reduction <add>, %65, %cst_28 [1] : vector<32x16xf32> to vector<32xf32>
    %67 = vector.shape_cast %66 : vector<32xf32> to vector<32x1xf32>
    %c0_29 = arith.constant 0 : index
    %c0_30 = arith.constant 0 : index
    %68 = vector.load %arg11[%c0_29, %c0_30] : memref<1x32xf32, #tpu.memory_space<vmem>>, vector<1x32xf32>
    %69 = vector.broadcast %68 : vector<1x32xf32> to vector<32x32xf32>
    %70 = arith.mulf %49, %69 : vector<32x32xf32>
    %cst_31 = arith.constant dense<0.000000e+00> : vector<32xf32>
    %71 = vector.multi_reduction <add>, %70, %cst_31 [1] : vector<32x32xf32> to vector<32xf32>
    %72 = vector.shape_cast %71 : vector<32xf32> to vector<32x1xf32>
    %73 = arith.addf %67, %72 : vector<32x1xf32>
    %c0_32 = arith.constant 0 : index
    %c0_33 = arith.constant 0 : index
    %74 = vector.load %arg12[%c0_32, %c0_33] : memref<1x1xf32, #tpu.memory_space<vmem>>, vector<1x1xf32>
    %75 = vector.broadcast %74 : vector<1x1xf32> to vector<32x1xf32>
    %76 = arith.mulf %62, %75 : vector<32x1xf32>
    %77 = arith.addf %73, %76 : vector<32x1xf32>
    %c0_34 = arith.constant 0 : index
    %c0_35 = arith.constant 0 : index
    %78 = vector.load %arg13[%c0_34, %c0_35] : memref<1x1xf32, #tpu.memory_space<vmem>>, vector<1x1xf32>
    %79 = vector.broadcast %78 : vector<1x1xf32> to vector<32x1xf32>
    %80 = arith.addf %77, %79 : vector<32x1xf32>
    %c0_36 = arith.constant 0 : index
    %c0_37 = arith.constant 0 : index
    %81 = vector.load %arg14[%c0_36, %c0_37] : memref<32x1xf32, #tpu.memory_space<vmem>>, vector<32x1xf32>
    tpu.vector_store %arg14[%c0_36, %c0_37], %80 {strides = array<i32>} : memref<32x1xf32, #tpu.memory_space<vmem>>, vector<32x1xf32>,
    return
  }
  func.func @transform_0(%arg0: i32) -> (i32, i32) {
    %c0_i32 = arith.constant 0 : i32
    %c0_i32_0 = arith.constant 0 : i32
    return %arg0, %c0_i32 : i32, i32
  }
  func.func @transform_1(%arg0: i32) -> (i32, i32) {
    %c0_i32 = arith.constant 0 : i32
    %c0_i32_0 = arith.constant 0 : i32
    return %arg0, %c0_i32 : i32, i32
  }
  func.func @transform_2(%arg0: i32) -> (i32, i32) {
    %c0_i32 = arith.constant 0 : i32
    %c0_i32_0 = arith.constant 0 : i32
    %c0_i32_1 = arith.constant 0 : i32
    return %c0_i32, %c0_i32_0 : i32, i32
  }
  func.func @transform_3(%arg0: i32) -> (i32, i32) {
    %c0_i32 = arith.constant 0 : i32
    %c0_i32_0 = arith.constant 0 : i32
    %c0_i32_1 = arith.constant 0 : i32
    return %c0_i32, %c0_i32_0 : i32, i32
  }
  func.func @transform_4(%arg0: i32) -> (i32, i32) {
    %c0_i32 = arith.constant 0 : i32
    %c0_i32_0 = arith.constant 0 : i32
    %c0_i32_1 = arith.constant 0 : i32
    return %c0_i32, %c0_i32_0 : i32, i32
  }
  func.func @transform_5(%arg0: i32) -> (i32, i32) {
    %c0_i32 = arith.constant 0 : i32
    %c0_i32_0 = arith.constant 0 : i32
    %c0_i32_1 = arith.constant 0 : i32
    return %c0_i32, %c0_i32_0 : i32, i32
  }
  func.func @transform_6(%arg0: i32) -> (i32, i32) {
    %c0_i32 = arith.constant 0 : i32
    %c0_i32_0 = arith.constant 0 : i32
    %c0_i32_1 = arith.constant 0 : i32
    return %c0_i32, %c0_i32_0 : i32, i32
  }
  func.func @transform_7(%arg0: i32) -> (i32, i32) {
    %c0_i32 = arith.constant 0 : i32
    %c0_i32_0 = arith.constant 0 : i32
    %c0_i32_1 = arith.constant 0 : i32
    return %c0_i32, %c0_i32_0 : i32, i32
  }
  func.func @transform_8(%arg0: i32) -> (i32, i32) {
    %c0_i32 = arith.constant 0 : i32
    %c0_i32_0 = arith.constant 0 : i32
    %c0_i32_1 = arith.constant 0 : i32
    return %c0_i32, %c0_i32_0 : i32, i32
  }
  func.func @transform_9(%arg0: i32) -> (i32, i32) {
    %c0_i32 = arith.constant 0 : i32
    %c0_i32_0 = arith.constant 0 : i32
    %c0_i32_1 = arith.constant 0 : i32
    return %c0_i32, %c0_i32_0 : i32, i32
  }
  func.func @transform_10(%arg0: i32) -> (i32, i32) {
    %c0_i32 = arith.constant 0 : i32
    %c0_i32_0 = arith.constant 0 : i32
    %c0_i32_1 = arith.constant 0 : i32
    return %c0_i32, %c0_i32_0 : i32, i32
  }
  func.func @transform_11(%arg0: i32) -> (i32, i32) {
    %c0_i32 = arith.constant 0 : i32
    %c0_i32_0 = arith.constant 0 : i32
    %c0_i32_1 = arith.constant 0 : i32
    return %c0_i32, %c0_i32_0 : i32, i32
  }
  func.func @transform_12(%arg0: i32) -> (i32, i32) {
    %c0_i32 = arith.constant 0 : i32
    %c0_i32_0 = arith.constant 0 : i32
    %c0_i32_1 = arith.constant 0 : i32
    return %c0_i32, %c0_i32_0 : i32, i32
  }
  func.func @transform_13(%arg0: i32) -> (i32, i32) {
    %c0_i32 = arith.constant 0 : i32
    %c0_i32_0 = arith.constant 0 : i32
    return %arg0, %c0_i32 : i32, i32
  }
}

</mosaic_0001>

<bundles_post_ra>
// kernel: tpu_custom_call.1
= control target key start
LH: loop header
LB: loop body
LE: loop exit
PB: predicated region body
PF: predicated region fallthrough
CT: control target
= control target key end

     0   :  { %s1398_s29 = smov 0   ;;  %s1516_s0 = inlined_call_operand.vmem [shape: bf16[64,16], index: 0, kind: input, shape index: {}]   ;;  %s1517_s1 = inlined_call_operand.vmem [shape: s32[64,3], index: 1, kind: input, shape index: {}]   ;;  %s1518_s2 = inlined_call_operand.vmem [shape: bf16[16,32], index: 2, kind: input, shape index: {}]   ;;  %s1519_s3 = inlined_call_operand.vmem [shape: f32[1,32], index: 3, kind: input, shape index: {}]   ;;  %s1520_s4 = inlined_call_operand.vmem [shape: bf16[32,16], index: 4, kind: input, shape index: {}]   ;;  %s1521_s5 = inlined_call_operand.vmem [shape: f32[1,16], index: 5, kind: input, shape index: {}]   ;;  %s1522_s6 = inlined_call_operand.vmem [shape: bf16[16,32], index: 6, kind: input, shape index: {}]   ;;  %s1523_s7 = inlined_call_operand.vmem [shape: bf16[128,34], index: 7, kind: input, shape index: {}]   ;;  %s1524_s8 = inlined_call_operand.vmem [shape: f32[1,32], index: 8, kind: input, shape index: {}]   ;;  %s1525_s9 = inlined_call_operand.vmem [shape: f32[1,16], index: 9, kind: input, shape index: {}]   ;;  %s1526_s10 = inlined_call_operand.vmem [shape: f32[1,32], index: 10, kind: input, shape index: {}]   ;;  %s1527_s11 = inlined_call_operand.<no memory space> [shape: f32[1,1], index: 11, kind: input, shape index: {}]   ;;  %s1528_s13 = inlined_call_operand.vmem [shape: f32[64,1], index: 13, kind: output, shape index: {}]   ;;  %s1529_s12 = inlined_call_operand.<no memory space> [shape: f32[1,1], index: 12, kind: input, shape index: {}]  }
   0x1   :  { %v18_v0 = vstv %s1527_s11  ;;  %v20_v1 = vstv %s1529_s12 }
   0x2   :  { %19 = vst [vmem:[#allocation2] sm:$0x1] %v18_v0  ;;  %21 = vst [vmem:[#allocation3] sm:$0x1] %v20_v1 }
   0x3 LB: > { %s1159_s30 = sadd.s32 4294967295, %s1313_s29   ;;  %p1163_p0 = scmp.ge.s32.totalorder %s1313_s29, 1  ;;  %s1313_s29 = sphi %s1398_s29, %s27_s29  }
   0x4   : > { %p403_p1 = scmp.lt.s32.totalorder %s1313_s29, 3 }
   0x6   : > { %p404_p2 = pnand %p1163_p0, %p403_p1 }
   0x7   : > { %s1164_s12 = sshll.u32 (!%p404_p2), %s1159_s30, 2  ;;  %s1320_s20 = smov (!%p404_p2), 32  }
   0x8   : > { %407 = sbr.rel (%p404_p2) target bundleno = 913 (0x391), region = 72  ;;  %p453_p3 = scmp.lt.s32.totalorder (!%p404_p2), %s1164_s12, 7 }
   0x9   : > { %s1321_s25 = smov (!%p404_p2), 96  }
   0xd   : > { %v1293_v2 = vld [vmem:[%s1518_s2] sm:$0xff]   ;;  %s1531_s12 = smov (!%p453_p3, %s1164_s12), 7  ;;  %vm500_vm0 = vcmask 130048   ;;  %v1315_v5 = vmov 1   ;;  %v1296_v7 = vld [vmem:[%s1520_s4 + $0x8] sm:$0xff]   ;;  %v1316_v10 = vmov 0   ;;  %v645_v34 = vlaneseq }
   0xe   : > { %1231 = vmatprep.subr.bf16.mxu1 %v1293_v2  ;;  %s1165_s15 = sshll.u32 %s1531_s12, 2  ;;  %s1167_s19 = sshll.u32 %s1531_s12, 3  ;;  %1287 = vset.pattern.permute.xlu1 %v1315_v5  ;;  %v1297_v9 = vld [vmem:[%s1520_s4] sm:$0xff]   ;;  %v1298_v12 = vld [vmem:[%s1523_s7 + $0x38] sm:$0xff]   ;;  %v1299_v13 = vld [vmem:[%s1523_s7 + $0x30] sm:$0xff]   ;;  %v1317_v16 = vmov 2  }
   0xf   : > { %1232 = vmatpush3.bf16.msra.mxu1 %v1293_v2  ;;  %s456_s18 = scalar_lea.vmem %s1516_s0, %s1165_s15  ;;  %s462_s22 = scalar_lea.vmem %s1517_s1, %s1167_s19  ;;  %1286 = vset.pattern.permute.xlu0 %v1316_v10  ;;  %v1300_v15 = vld [vmem:[%s1523_s7 + $0x28] sm:$0xff]   ;;  %v1301_v17 = vld [vmem:[%s1523_s7 + $0x20] sm:$0xff]   ;;  %v1302_v18 = vld [vmem:[%s1523_s7 + $0x18] sm:$0xff]   ;;  %vm585_vm1 = vcmask 261120   ;;  %v646_v42 = vand.u32 127, %v645_v34  ;;  %v1318_v47 = vmov 0.0  }
  0x10   : > { %v1294_v3 = vld [vmem:[%s456_s18] sm:$0xff]   ;;  %v1295_v4 = vld [vmem:[%s456_s18 + $0x8] sm:$0xff]   ;;  %1237 = vmatprep.subr.bf16.mxu1 %v1296_v7  ;;  %v650_v11 = vld [vmem:[%s462_s22 + $0x18] sm:$0xff]  ;;  %1245 = vmatprep.subr.bf16.mxu0 %v1298_v12  ;;  %s1319_s18 = smov 127   ;;  %s468_s28 = scalar_lea.vmem %s1528_s13, %s1167_s19  ;;  %vm1086_vm14 = vcmask 7168  }
  0x11   : > { %1233 = vmatprep.mubr.msk.bf16.mxu1 %vm500_vm0, %v1294_v3  ;;  %v647_v6 = vld [vmem:[%s462_s22] sm:$0xff]  ;;  %v648_v8 = vld [vmem:[%s462_s22 + $0x8] sm:$0xff]  ;;  %v649_v14 = vld [vmem:[%s462_s22 + $0x10] sm:$0xff]  ;;  %1246 = vmatpush3.bf16.msra.mxu0 %v1298_v12 }
  0x12   : > { %1234 = vmatmul.mubr.msk.bf16.vlgmr.msra.gmra.mxu1 %vm500_vm0, %v1295_v4  ;;  %678 = vperm.xlu1 %1287, %v647_v6   ;;  %v1303_v19 = vld [vmem:[%s1523_s7 + $0x10] sm:$0xff]   ;;  %v1304_v20 = vld [vmem:[%s1523_s7 + $0x8] sm:$0xff]   ;;  %v1305_v21 = vld [vmem:[%s1523_s7] sm:$0xff]  }
  0x13   : > { %1238 = vmatpush3.bf16.msra.mxu1 %v1296_v7  ;;  %652 = vperm.xlu0 %1286, %v647_v6   ;;  %v1170_v26 = vld [vmem:[%s1519_s3] ss:$0 sm:$0xff] }
  0x14   : > { %1239 = vmatprep.subr.bf16.mxu1 %v1297_v9  ;;  %1247 = vmatprep.subr.bf16.mxu0 %v1299_v13 }
  0x15   : > { %1248 = vmatpush3.bf16.msra.mxu0 %v1299_v13 }
  0x16   : > { %681 = vperm.xlu1 %1287, %v648_v8   ;;  %1249 = vmatprep.subr.bf16.mxu0 %v1300_v15 }
  0x17   : > { %1240 = vmatpush3.bf16.msra.mxu1 %v1297_v9  ;;  %655 = vperm.xlu0 %1286, %v648_v8  }
  0x19   : > { %1250 = vmatpush3.bf16.msra.mxu0 %v1300_v15 }
  0x1a   : > { %1288 = vset.pattern.permute.xlu1 %v1316_v10  ;;  %1251 = vmatprep.subr.bf16.mxu0 %v1301_v17  ;;  %v1306_v10 = vld [vmem:[%s1522_s6] sm:$0xff]  }
  0x1b   : > { %661 = vperm.xlu1 %1288, %v650_v11   ;;  %658 = vperm.xlu0 %1286, %v649_v14  }
  0x1c   : > { %1265 = vmatprep.subr.bf16.mxu1 %v1306_v10 }
  0x1d   : > { %1252 = vmatpush3.bf16.msra.mxu0 %v1301_v17 }
  0x1e   : > { %1253 = vmatprep.subr.bf16.mxu0 %v1302_v18 }
  0x1f   : > { %1290 = vset.pattern.permute.xlu1 %v1315_v5  ;;  %1289 = vset.pattern.permute.xlu0 %v1315_v5 }
  0x20   : > { %687 = vperm.xlu1 %1290, %v650_v11   ;;  %684 = vperm.xlu0 %1289, %v649_v14  }
  0x21   : > { %1254 = vmatpush3.bf16.msra.mxu0 %v1302_v18 }
  0x22   : > { %1255 = vmatprep.subr.bf16.mxu0 %v1303_v19 }
  0x24   : > { %1291 = vset.pattern.permute.xlu1 %v1317_v16  ;;  %1292 = vset.pattern.permute.xlu0 %v1317_v16 }
  0x25   : > { %706 = vperm.xlu1 %1291, %v647_v6   ;;  %709 = vperm.xlu0 %1292, %v648_v8  }
  0x26   : > { %1256 = vmatpush3.bf16.msra.mxu0 %v1303_v19 }
  0x27   : > { %1257 = vmatprep.subr.bf16.mxu0 %v1304_v20 }
  0x29   : > { %712 = vperm.xlu1 %1291, %v649_v14  }
  0x2a   : > { %1258 = vmatpush3.bf16.msra.mxu0 %v1304_v20 }
  0x2b   : > { %1259 = vmatprep.subr.bf16.mxu0 %v1305_v21 }
  0x2d   : > { %715 = vperm.xlu1 %1291, %v650_v11   ;;  %v1176_v11 = vld [vmem:[%s1521_s5] ss:$0 sm:$0xff] }
  0x2e   : > { %1260 = vmatpush3.bf16.msra.mxu0 %v1305_v21 }
  0x8d   : > { %v679_v22 = vpop.permute.xlu1 %678 }
  0x8e   : > { %v653_v32 = vpop.permute.xlu0 %652  ;;  %vm689_vm2 = vcmp.eq.s32.totalorder %v679_v22, %v646_v42 }
  0x8f   : > { %vm663_vm4 = vcmp.eq.s32.totalorder %v653_v32, %v646_v42  ;;  %v1185_v48 = vsel %vm689_vm2, 1.0, %v1318_v47 }
  0x90   : > { %v1181_v50 = vsel %vm663_vm4, 1.0, %v1318_v47 }
  0x91   : > { %v682_v24 = vpop.permute.xlu1 %681 }
  0x92   : > { %v656_v40 = vpop.permute.xlu0 %655  ;;  %vm690_vm3 = vcmp.eq.s32.totalorder %v682_v24, %v646_v42 }
  0x93   : > { %vm664_vm5 = vcmp.eq.s32.totalorder %v656_v40, %v646_v42  ;;  %v1186_v49 = vsel %vm690_vm3, 1.0, %v1318_v47 }
  0x94   : > { %v1182_v51 = vsel %vm664_vm5, 1.0, %v1318_v47  ;;  %v701_v56 = vpack.c.bf16 %v1186_v49, %v1185_v48 }
  0x95   : > { %v675_v57 = vpack.c.bf16 %v1182_v51, %v1181_v50 }
  0x96   : > { %v662_v35 = vpop.permute.xlu1 %661  ;;  %v659_v45 = vpop.permute.xlu0 %658 }
  0x97   : > { %vm666_vm6 = vcmp.eq.s32.totalorder %v662_v35, %v646_v42  ;;  %vm665_vm8 = vcmp.eq.s32.totalorder %v659_v45, %v646_v42  ;;  %v703_v2 = vadd.bf16 %v701_v56, %v675_v57  ;;  %v1205_v35 = vld [vmem:[%s1525_s9] ss:$0 sm:$0xff] }
  0x98   : > { %v1184_v52 = vsel %vm666_vm6, 1.0, %v1318_v47  ;;  %v1183_v54 = vsel %vm665_vm8, 1.0, %v1318_v47 }
  0x99   : > { %v676_v60 = vpack.c.bf16 %v1184_v52, %v1183_v54 }
  0x9b   : > { %v688_v44 = vpop.permute.xlu1 %687  ;;  %v685_v55 = vpop.permute.xlu0 %684 }
  0x9c   : > { %vm692_vm7 = vcmp.eq.s32.totalorder %v688_v44, %v646_v42  ;;  %vm691_vm9 = vcmp.eq.s32.totalorder %v685_v55, %v646_v42 }
  0x9d   : > { %v1188_v53 = vsel %vm692_vm7, 1.0, %v1318_v47  ;;  %v1187_v58 = vsel %vm691_vm9, 1.0, %v1318_v47 }
  0x9e   : > { %v702_v61 = vpack.c.bf16 %v1188_v53, %v1187_v58 }
  0xa0   : > { %v707_v46 = vpop.permute.xlu1 %706  ;;  %v710_v63 = vpop.permute.xlu0 %709  ;;  %v704_v3 = vadd.bf16 %v702_v61, %v676_v60  ;;  %v1204_v61 = vld [vmem:[%s1524_s8] ss:$0 sm:$0xff] }
  0xa1   : > { %vm717_vm10 = vcmp.eq.s32.totalorder %v707_v46, %v646_v42  ;;  %vm718_vm12 = vcmp.eq.s32.totalorder %v710_v63, %v646_v42 }
  0xa2   : > { %v1189_v62 = vsel %vm717_vm10, 1.0, %v1318_v47  ;;  %v1190_v4 = vsel %vm718_vm12, 1.0, %v1318_v47 }
  0xa3   : > { %v729_v6 = vpack.c.bf16 %v1190_v4, %v1189_v62 }
  0xa4   : > { %v713_v59 = vpop.permute.xlu1 %712 }
  0xa5   : > { %vm719_vm11 = vcmp.eq.s32.totalorder %v713_v59, %v646_v42  ;;  %v731_v8 = vadd.bf16 %v729_v6, %v703_v2  ;;  %v1208_v59 = vld [vmem:[#allocation3] ss:$0 sm:$0xff] }
  0xa6   : > { %v1191_v0 = vsel %vm719_vm11, 1.0, %v1318_v47 }
  0xa7   : > { %1261 = vmatprep.mubr.bf16.mxu0 %v731_v8 }
  0xa8   : > { %v716_v1 = vpop.permute.xlu1 %715 }
  0xa9   : > { %vm720_vm13 = vcmp.eq.s32.totalorder %v716_v1, %v646_v42 }
  0xaa   : > { %v1192_v5 = vsel %vm720_vm13, 1.0, %v1318_v47 }
  0xab   : > { %v730_v7 = vpack.c.bf16 %v1192_v5, %v1191_v0 }
  0xad   : > { %v732_v9 = vadd.bf16 %v730_v7, %v704_v3  ;;  %v1206_v3 = vld [vmem:[%s1526_s10] ss:$0 sm:$0xff] }
  0xaf   : > { %1262 = vmatmul.mubr.bf16.vlgmr.msra.gmra.mxu0 %v732_v9 }
  0xd2   : > { %v1235_v23 = vpop.f32.mrf.mxu1 }
  0xd3   : > { %v550_v30 = vadd.f32 %v1235_v23, %v1170_v26 }
  0xd4   : > { %v541_v25 = vpop.f32.mrf.mxu1 }
  0xd5   : > { %v542_v28 = vadd.f32 %v1170_v26, %v541_v25  ;;  %v558_v39 = vmax.f32 %v550_v30, 0.0 }
  0xd6   : > { %v1236_v27 = vpop.f32.mrf.mxu1 }
  0xd7   : > { %v553_v29 = vadd.f32 %v1236_v27, %v1170_v26  ;;  %v556_v37 = vmax.f32 %v542_v28, 0.0 }
  0xd8   : > { %v544_v31 = vpop.f32.mrf.mxu1 }
  0xd9   : > { %v545_v33 = vadd.f32 %v1170_v26, %v544_v31  ;;  %v559_v36 = vmax.f32 %v553_v29, 0.0 }
  0xdb   : > { %v557_v38 = vmax.f32 %v545_v33, 0.0  ;;  %v561_v43 = vpack.c.bf16 %v559_v36, %v558_v39 }
  0xdd   : > { %v560_v41 = vpack.c.bf16 %v557_v38, %v556_v37 }
  0xdf   : > { %1241 = vmatprep.mubr.msk.bf16.mxu1 %vm585_vm1, %v560_v41 }
  0xe0   : > { %1242 = vmatmul.mubr.msk.bf16.vlgmr.msra.gmra.mxu1 %vm585_vm1, %v561_v43 }
  0xe1   : > { %1266 = vmatpush3.bf16.msra.mxu1 %v1306_v10 }
 0x16f   : > { %v1481_v47 = vpop.f32.mrf.mxu0 }
 0x171   : > { %v1483_v48 = vpop.f32.mrf.mxu0 }
 0x173   : > { %v1485_v49 = vpop.f32.mrf.mxu0 }
 0x175   : > { %v834_v51 = vpop.f32.mrf.mxu0 }
 0x1a0   : > { %v1243_v12 = vpop.f32.mrf.mxu1 }
 0x1a1   : > { %v635_v13 = vadd.f32 %v1243_v12, %v1176_v11 }
 0x1a2   : > { %v626_v14 = vpop.f32.mrf.mxu1 }
 0x1a3   : > { %v627_v15 = vadd.f32 %v1176_v11, %v626_v14  ;;  %v643_v17 = vmax.f32 %v635_v13, 0.0 }
 0x1a4   : > { %v1244_v16 = vpop.f32.mrf.mxu1 }
 0x1a5   : > { %v641_v18 = vmax.f32 %v627_v15, 0.0  ;;  %v638_v19 = vadd.f32 %v1244_v16, %v1176_v11  ;;  %v944_v26 = vmul.f32 %v643_v17, %v643_v17  ;;  %v932_v37 = vsel %vm500_vm0, %v643_v17, 0.0 }
 0x1a6   : > { %v629_v20 = vpop.f32.mrf.mxu1  ;;  %v999_v41 = vmul.f32 %v1205_v35, %v643_v17 }
 0x1a7   : > { %v630_v21 = vadd.f32 %v1176_v11, %v629_v20  ;;  %v942_v22 = vmul.f32 %v641_v18, %v641_v18  ;;  %v644_v23 = vmax.f32 %v638_v19, 0.0  ;;  %v952_v31 = vsel %vm500_vm0, %v944_v26, 0.0 }
 0x1a8   : > { %v926_v34 = vsel %vm500_vm0, %v641_v18, 0.0  ;;  %v997_v38 = vmul.f32 %v1205_v35, %v641_v18  ;;  %v1007_v42 = vsel %vm500_vm0, %v999_v41, 0.0 }
 0x1a9   : > { %v642_v24 = vmax.f32 %v630_v21, 0.0  ;;  %v946_v25 = vsel %vm500_vm0, %v942_v22, 0.0  ;;  %v847_v29 = vpack.c.bf16 %v644_v23, %v643_v17  ;;  %v945_v32 = vmul.f32 %v644_v23, %v644_v23  ;;  %v1207_v22 = vld [vmem:[#allocation2] ss:$0 sm:$0xff] }
 0x1aa   : > { %947 = vadd.xlane.f32.xlu0 %v946_v25  ;;  %v935_v39 = vsel %vm500_vm0, %v644_v23, 0.0  ;;  %v1001_v40 = vsel %vm500_vm0, %v997_v38, 0.0  ;;  %v1000_v43 = vmul.f32 %v1205_v35, %v644_v23 }
 0x1ab   : > { %v846_v27 = vpack.c.bf16 %v642_v24, %v641_v18  ;;  %v943_v28 = vmul.f32 %v642_v24, %v642_v24  ;;  %v955_v33 = vsel %vm500_vm0, %v945_v32, 0.0  ;;  %v929_v36 = vsel %vm500_vm0, %v642_v24, 0.0 }
 0x1ac   : > { %v1010_v44 = vsel %vm500_vm0, %v1000_v43, 0.0  ;;  %v998_v45 = vmul.f32 %v1205_v35, %v642_v24 }
 0x1ad   : > { %1267 = vmatprep.mubr.msk.bf16.mxu1 %vm500_vm0, %v846_v27  ;;  %v949_v30 = vsel %vm500_vm0, %v943_v28, 0.0 }
 0x1ae   : > { %950 = vadd.xlane.f32.xlu1 %v949_v30  ;;  %953 = vadd.xlane.f32.xlu0 %v952_v31  ;;  %v1004_v46 = vsel %vm500_vm0, %v998_v45, 0.0 }
 0x1af   : > { %1268 = vmatmul.mubr.msk.bf16.vlgmr.msra.gmra.mxu1 %vm500_vm0, %v847_v29 }
 0x1b2   : > { %956 = vadd.xlane.f32.xlu0 %v955_v33  ;;  %927 = vadd.xlane.f32.xlu1 %v926_v34 }
 0x1b6   : > { %930 = vadd.xlane.f32.xlu0 %v929_v36  ;;  %933 = vadd.xlane.f32.xlu1 %v932_v37 }
 0x1ba   : > { %936 = vadd.xlane.f32.xlu0 %v935_v39  ;;  %1002 = vadd.xlane.f32.xlu1 %v1001_v40 }
 0x1be   : > { %1008 = vadd.xlane.f32.xlu1 %v1007_v42 }
 0x1c2   : > { %1011 = vadd.xlane.f32.xlu1 %v1010_v44 }
 0x1c6   : > { %1005 = vadd.xlane.f32.xlu1 %v1004_v46 }
 0x233   : > { %v948_v50 = vpop.xlane.xlu0 %947 }
 0x234   : > { %v958_v56 = vadd.f32 %v948_v50, %v1483_v48 }
 0x237   : > { %v951_v52 = vpop.xlane.xlu1 %950  ;;  %v954_v53 = vpop.xlane.xlu0 %953 }
 0x238   : > { %v959_v54 = vadd.f32 %v951_v52, %v834_v51  ;;  %v960_v55 = vadd.f32 %v1481_v47, %v954_v53 }
 0x23a   : > { %972 = vrot.lane.b32.xlu0 %v959_v54, %s1319_s18  ;;  %974 = vrot.lane.b32.xlu1 %v960_v55, %s1319_s18 }
 0x23b   : > { %v957_v57 = vpop.xlane.xlu0 %956  ;;  %v928_v23 = vpop.xlane.xlu1 %927 }
 0x23c   : > { %v961_v58 = vadd.f32 %v1485_v49, %v957_v57  ;;  %v938_v36 = vadd.f32 %v928_v23, %v1483_v48 }
 0x23e   : > { %970 = vrot.lane.b32.xlu1 %v958_v56, %s1319_s18  ;;  %v962_v42 = vmul.f32 %v938_v36, %v938_v36 }
 0x23f   : > { %v934_v24 = vpop.xlane.xlu1 %933  ;;  %v931_v27 = vpop.xlane.xlu0 %930 }
 0x240   : > { %v939_v37 = vadd.f32 %v931_v27, %v834_v51  ;;  %v940_v38 = vadd.f32 %v1481_v47, %v934_v24 }
 0x242   : > { %976 = vrot.lane.b32.xlu1 %v961_v58, %s1319_s18  ;;  %v963_v43 = vmul.f32 %v939_v37, %v939_v37  ;;  %v964_v44 = vmul.f32 %v940_v38, %v940_v38 }
 0x243   : > { %v1003_v25 = vpop.xlane.xlu1 %1002  ;;  %v937_v29 = vpop.xlane.xlu0 %936 }
 0x244   : > { %v941_v39 = vadd.f32 %v1485_v49, %v937_v29 }
 0x246   : > { %1063 = vrot.lane.b32.xlu1 %v1208_v59, %s1320_s20  ;;  %v965_v45 = vmul.f32 %v941_v39, %v941_v39 }
 0x247   : > { %v1009_v26 = vpop.xlane.xlu1 %1008 }
 0x24b   : > { %v1012_v28 = vpop.xlane.xlu1 %1011 }
 0x24f   : > { %v1006_v30 = vpop.xlane.xlu1 %1005 }
 0x26f   : > { %v1269_v60 = vpop.f32.mrf.mxu1 }
 0x270   : > { %v905_v62 = vadd.f32 %v1269_v60, %v1481_v47 }
 0x271   : > { %v896_v63 = vpop.f32.mrf.mxu1 }
 0x272   : > { %v920_v0 = vadd.f32 %v1204_v61, %v905_v62  ;;  %v897_v1 = vadd.f32 %v896_v63, %v1483_v48 }
 0x273   : > { %v1270_v2 = vpop.f32.mrf.mxu1 }
 0x274   : > { %v924_v4 = vmax.f32 %v920_v0, 0.0  ;;  %v918_v5 = vadd.f32 %v1204_v61, %v897_v1  ;;  %v908_v6 = vadd.f32 %v1270_v2, %v1485_v49 }
 0x275   : > { %v899_v7 = vpop.f32.mrf.mxu1 }
 0x276   : > { %v922_v8 = vmax.f32 %v918_v5, 0.0  ;;  %v921_v9 = vadd.f32 %v1204_v61, %v908_v6  ;;  %v900_v10 = vadd.f32 %v899_v7, %v834_v51  ;;  %v1022_v11 = vmul.f32 %v1206_v3, %v924_v4 }
 0x278   : > { %v925_v12 = vmax.f32 %v921_v9, 0.0  ;;  %v919_v13 = vadd.f32 %v1204_v61, %v900_v10  ;;  %v1030_v14 = vsel %vm585_vm1, %v1022_v11, 0.0  ;;  %v1020_v15 = vmul.f32 %v1206_v3, %v922_v8 }
 0x279   : > { %1031 = vadd.xlane.f32.xlu0 %v1030_v14 }
 0x27a   : > { %v923_v16 = vmax.f32 %v919_v13, 0.0  ;;  %v1024_v17 = vsel %vm585_vm1, %v1020_v15, 0.0  ;;  %v1023_v18 = vmul.f32 %v1206_v3, %v925_v12 }
 0x27c   : > { %v1033_v19 = vsel %vm585_vm1, %v1023_v18, 0.0  ;;  %v1021_v20 = vmul.f32 %v1206_v3, %v923_v16 }
 0x27d   : > { %1025 = vadd.xlane.f32.xlu0 %v1024_v17 }
 0x27e   : > { %v1027_v21 = vsel %vm585_vm1, %v1021_v20, 0.0 }
 0x281   : > { %1034 = vadd.xlane.f32.xlu0 %v1033_v19 }
 0x285   : > { %1028 = vadd.xlane.f32.xlu0 %v1027_v21 }
 0x29b   : > { %1046 = vrot.lane.b32.xlu0 %v1207_v22, %s1320_s20 }
 0x2ac   : > { %v973_v31 = vpop.permute.xlu0 %972  ;;  %v975_v32 = vpop.permute.xlu1 %974 }
 0x2ad   : > { %v983_v46 = vsub.f32 %v963_v43, %v973_v31  ;;  %v984_v50 = vsub.f32 %v964_v44, %v975_v32 }
 0x2af   : > { %v987_v55 = vmul.f32 0.5, %v983_v46  ;;  %v988_v56 = vmul.f32 0.5, %v984_v50 }
 0x2b0   : > { %v971_v34 = vpop.permute.xlu1 %970 }
 0x2b1   : > { %v982_v52 = vsub.f32 %v962_v42, %v971_v34 }
 0x2b3   : > { %v986_v57 = vmul.f32 0.5, %v982_v52 }
 0x2b4   : > { %v977_v40 = vpop.permute.xlu1 %976 }
 0x2b5   : > { %v985_v53 = vsub.f32 %v965_v45, %v977_v40 }
 0x2b7   : > { %v989_v48 = vmul.f32 0.5, %v985_v53 }
 0x2b8   : > { %v1064_v62 = vpop.permute.xlu1 %1063 }
 0x302   : > { %v1032_v33 = vpop.xlane.xlu0 %1031 }
 0x303   : > { %v1038_v63 = vadd.f32 %v1032_v33, %v1009_v26 }
 0x306   : > { %v1026_v35 = vpop.xlane.xlu0 %1025 }
 0x307   : > { %v1036_v51 = vadd.f32 %v1026_v35, %v1003_v25 }
 0x30a   : > { %v1035_v41 = vpop.xlane.xlu0 %1034 }
 0x30b   : > { %v1039_v0 = vadd.f32 %v1035_v41, %v1012_v28 }
 0x30e   : > { %v1029_v54 = vpop.xlane.xlu0 %1028 }
 0x30f   : > { %v1037_v58 = vadd.f32 %v1029_v54, %v1006_v30 }
 0x312   : > { %v1047_v47 = vpop.permute.xlu0 %1046 }
 0x313   : > { %v1049_v59 = vmul.f32 %v1047_v47, %v986_v57  ;;  %v1050_v49 = vmul.f32 %v1047_v47, %v987_v55  ;;  %v1051_v60 = vmul.f32 %v1047_v47, %v988_v56  ;;  %v1052_v61 = vmul.f32 %v1047_v47, %v989_v48 }
 0x315   : > { %v1054_v1 = vadd.f32 %v1050_v49, %v1037_v58  ;;  %v1053_v2 = vadd.f32 %v1049_v59, %v1036_v51  ;;  %v1056_v5 = vadd.f32 %v1052_v61, %v1039_v0  ;;  %v1055_v6 = vadd.f32 %v1051_v60, %v1038_v63 }
 0x317   : > { %v1067_v3 = vadd.f32 %v1064_v62, %v1054_v1  ;;  %v1066_v4 = vadd.f32 %v1064_v62, %v1053_v2  ;;  %v1069_v7 = vadd.f32 %v1064_v62, %v1056_v5  ;;  %v1068_v8 = vadd.f32 %v1064_v62, %v1055_v6 }
 0x319   : > { %1076 = vrot.lane.b32.xlu1 %v1067_v3, %s1321_s25  ;;  %1074 = vrot.lane.b32.xlu0 %v1066_v4, %s1321_s25 }
 0x31d   : > { %1080 = vrot.lane.b32.xlu1 %v1069_v7, %s1321_s25  ;;  %1078 = vrot.lane.b32.xlu0 %v1068_v8, %s1321_s25 }
 0x38b   : > { %v1077_v9 = vpop.permute.xlu1 %1076  ;;  %v1075_v10 = vpop.permute.xlu0 %1074 }
 0x38c   : > { %1087 = vst.msk [vmem:[%s468_s28] sm:$0xff] %vm1086_vm14, %v1075_v10  ;;  %1088 = vst.msk [vmem:[%s468_s28 + $0x8] sm:$0xff] %vm1086_vm14, %v1077_v9 }
 0x38f   : > { %v1081_v11 = vpop.permute.xlu1 %1080  ;;  %v1079_v12 = vpop.permute.xlu0 %1078 }
 0x390   : > { %1089 = vst.msk [vmem:[%s468_s28 + $0x10] sm:$0xff] %vm1086_vm14, %v1079_v12  ;;  %1090 = vst.msk [vmem:[%s468_s28 + $0x18] sm:$0xff] %vm1086_vm14, %v1081_v11 }
 0x391 PF: > { %s27_s29 = sadd.s32 1, %s1313_s29  }
 0x392   : > { %p24_p4 = scmp.ge.s32.totalorder %s27_s29, 4  }
 0x394   :  { %26 = sbr.rel (!%p24_p4) target bundleno = 3 (0x3), region = 105 }

</bundles_post_ra>
